<compile_context>
chip_gen: v7x
topology: tpu7x:2x2x1
jax: 0.10.0
libtpu: 0.0.40
codegen_flags: <defaults>
</compile_context>

<pallas_src>
import functools

import jax
import jax.numpy as jnp
from jax.experimental import pallas as pl
from jax.experimental.pallas import tpu as pltpu


def _phase_shuffle_kernel(off_ref, lh_ref, rh_ref, x_hbm, o_ref, scratch, sem,
                          *, n, tq, nq, pad):
    """off_ref: SMEM (1,) int32 = n - k in [0, 2n].
    lh_ref/rh_ref: (n, C) reflected halos for this batch element (VMEM).
    x_hbm: full (B, L, C) input left in HBM (pl.ANY); we DMA from it.
    o_ref: (tq, C) auto-pipelined output block (VMEM).
    scratch: (tq + 2*pad, C) VMEM staging, used only on boundary tiles."""
    b = pl.program_id(0)
    off = off_ref[0]

    if nq == 1:
        # Single time tile (tq == L): splice halos + whole slab, shift-copy.
        # scratch[pad - n + j] == padded_x[j] for j in [0, L + 2n).
        scratch[pl.ds(pad - n, n), :] = lh_ref[...]
        cp = pltpu.make_async_copy(
            x_hbm.at[b], scratch.at[pl.ds(pad, tq), :], sem)
        cp.start()
        cp.wait()
        scratch[pl.ds(pad + tq, n), :] = rh_ref[...]
        o_ref[...] = scratch[pl.ds(off + (pad - n), tq), :]
        return

    q = pl.program_id(1)
    t0 = q * tq
    is_first = q == 0
    is_last = q == nq - 1

    @pl.when(jnp.logical_not(is_first | is_last))
    def _interior():
        # Pure data movement: shifted HBM window -> output block, no staging,
        # no in-VMEM copy. This is the path taken by L//tq - 2 of the tiles.
        cp = pltpu.make_async_copy(
            x_hbm.at[b, pl.ds(t0 + off - n, tq), :], o_ref, sem)
        cp.start()
        cp.wait()

    @pl.when(is_first)
    def _first():
        # scratch[pad - n + j] == padded_x[j] for j in [0, tq + 2n).
        scratch[pl.ds(pad - n, n), :] = lh_ref[...]
        cp = pltpu.make_async_copy(
            x_hbm.at[b, pl.ds(0, tq + n), :],
            scratch.at[pl.ds(pad, tq + n), :], sem)
        cp.start()
        cp.wait()
        o_ref[...] = scratch[pl.ds(off + (pad - n), tq), :]

    @pl.when(is_last)
    def _last():
        # scratch[j] == padded_x[t0 + j] for j in [0, tq + 2n).
        cp = pltpu.make_async_copy(
            x_hbm.at[b, pl.ds(t0 - n, tq + n), :],
            scratch.at[pl.ds(0, tq + n), :], sem)
        cp.start()
        cp.wait()
        scratch[pl.ds(tq + n, n), :] = rh_ref[...]
        o_ref[...] = scratch[pl.ds(off, tq), :]


def _choose_time_tile(L, target, n):
    """Largest multiple-of-8 divisor of L that is <= target (and >= n);
    falls back to the whole time axis if none exists."""
    if L <= target:
        return L
    hi = target - (target % 8)
    for cand in range(hi, 7, -8):
        if L % cand == 0 and cand >= n:
            return cand
    return L


@functools.partial(jax.jit, static_argnames=("n", "time_tile"))
def phase_shuffle(x, phase, *, n, time_tile=512):
    """x: (B, L, C); phase: scalar int32 in [-n, n]; n: static max shift."""
    B, L, C = x.shape
    if not (0 <= n < L):
        raise ValueError("require 0 <= n < L for single-bounce reflection")
    if n == 0:
        return x  # phase can only be 0

    tq = _choose_time_tile(L, time_tile, n)
    nq = L // tq
    pad = max(8, -(-n // 8) * 8)  # halo landing pad: >= n, 8-sublane aligned

    # Tiny reflected halos (O(B*2n*C) HBM) replace the old full-tensor
    # reflect-pad, which cost an extra O(B*L*C) HBM read + write pass.
    lh = jnp.flip(x[:, 1:n + 1, :], axis=1)          # lh[p] = x[n - p]
    rh = jnp.flip(x[:, L - 1 - n:L - 1, :], axis=1)  # rh[j] = x[L - 2 - j]

    # Clamp so |phase| > n can never produce an OOB window (TPU has no
    # runtime bounds check on VMEM reads).
    offset = jnp.clip(n - jnp.asarray(phase, jnp.int32), 0, 2 * n).reshape((1,))

    kernel = functools.partial(_phase_shuffle_kernel, n=n, tq=tq, nq=nq, pad=pad)

    grid_spec = pltpu.PrefetchScalarGridSpec(
        num_scalar_prefetch=1,
        grid=(B, nq),
        in_specs=[
            pl.BlockSpec((None, n, C), lambda b, q, off: (b, 0, 0)),  # left halo
            pl.BlockSpec((None, n, C), lambda b, q, off: (b, 0, 0)),  # right halo
            pl.BlockSpec(memory_space=pl.ANY),                        # x stays in HBM
        ],
        out_specs=pl.BlockSpec((None, tq, C), lambda b, q, off: (b, q, 0)),
        scratch_shapes=[
            pltpu.VMEM((tq + 2 * pad, C), x.dtype),
            pltpu.SemaphoreType.DMA,
        ],
    )

    # Explicit scoped-VMEM budget: double-buffered output block + boundary
    # scratch + halos + headroom, clamped to stay under v7x's 64 MiB/TC.
    itemsize = jnp.dtype(x.dtype).itemsize
    need = itemsize * C * (2 * tq + (tq + 2 * pad) + 4 * n)
    vmem_limit = int(min(max(2 * need + (8 << 20), 32 << 20), 48 << 20))

    return pl.pallas_call(
        kernel,
        out_shape=jax.ShapeDtypeStruct((B, L, C), x.dtype),
        grid_spec=grid_spec,
        compiler_params=pltpu.CompilerParams(
            dimension_semantics=("parallel", "parallel"),
            vmem_limit_bytes=vmem_limit),
    )(offset, lh, rh, x)


def phase_shuffle_ref(x, phase, n):
    """Pure-JAX reference (reflect-pad + slice), canonical WaveGAN semantics."""
    k = int(phase)
    pad_left, pad_right = max(k, 0), max(-k, 0)
    xp = jnp.pad(x, ((0, 0), (pad_left, pad_right), (0, 0)), mode="reflect")
    return xp[:, pad_right:pad_right + x.shape[1], :]


if __name__ == "__main__":
    key = jax.random.PRNGKey(0)
    kx, kp = jax.random.split(key)
    B, L, C, n = 2, 64, 128, 2
    x = jax.random.normal(kx, (B, L, C), dtype=jnp.float32)

    # Deterministic phase draw: integer uniform in [-n, n].
    phase = jax.random.randint(kp, (), -n, n + 1, dtype=jnp.int32)
    out = phase_shuffle(x, phase, n=n)
    jax.block_until_ready(out)
    assert out.shape == (B, L, C), out.shape
    assert jnp.array_equal(out, phase_shuffle_ref(x, int(phase), n)), \
        "kernel output mismatch vs reference (sampled phase)"

    # Exhaustive check over every phase value, on both the single-tile path
    # (time_tile >= L) and the multi-tile first/interior/last paths.
    for tt in (512, 16):
        for k in range(-n, n + 1):
            out_k = phase_shuffle(x, jnp.int32(k), n=n, time_tile=tt)
            jax.block_until_ready(out_k)
            assert jnp.array_equal(out_k, phase_shuffle_ref(x, k, n)), \
                f"kernel output mismatch vs reference (time_tile={tt}, phase={k})"

    print("KERNEL_OK")
</pallas_src>

<mosaic_0001>
module attributes {stable_mosaic.version = 11 : i64} {
  func.func @_phase_shuffle_kernel(%arg0: i32, %arg1: i32, %arg2: memref<1xi32, #tpu.memory_space<smem>>, %arg3: memref<1x2x128xf32, #tpu.memory_space<vmem>>, %arg4: memref<1x2x128xf32, #tpu.memory_space<vmem>>, %arg5: memref<2x64x128xf32, #tpu.memory_space<any>>, %arg6: memref<1x64x128xf32, #tpu.memory_space<vmem>>, %arg7: memref<80x128xf32, #tpu.memory_space<vmem>>, %arg8: memref<!tpu.dma_semaphore, #tpu.memory_space<semaphore_mem>>) attributes {dimension_semantics = [#tpu.dimension_semantics<parallel>, #tpu.dimension_semantics<parallel>], iteration_bounds = array<i64: 2, 1>, scalar_prefetch = 1 : i64, scratch_operands = 2 : i64, tpu.core_type = #tpu.core_type<tc>, window_params = [{transform_indices = @transform_0, window_bounds = array<i64: 1, 2, 128>}, {transform_indices = @transform_1, window_bounds = array<i64: 1, 2, 128>}, {}, {transform_indices = @transform_3, window_bounds = array<i64: 1, 64, 128>}]} {
    %c0 = arith.constant 0 : index
    %0 = memref.load %arg2[%c0] : memref<1xi32, #tpu.memory_space<smem>>
    %c0_0 = arith.constant 0 : index
    %c0_1 = arith.constant 0 : index
    %c0_2 = arith.constant 0 : index
    %1 = vector.load %arg3[%c0_0, %c0_1, %c0_2] : memref<1x2x128xf32, #tpu.memory_space<vmem>>, vector<1x2x128xf32>
    %2 = vector.shape_cast %1 : vector<1x2x128xf32> to vector<2x128xf32>
    %c6 = arith.constant 6 : index
    %c0_3 = arith.constant 0 : index
    %3 = vector.load %arg7[%c6, %c0_3] : memref<80x128xf32, #tpu.memory_space<vmem>>, vector<2x128xf32>
    tpu.vector_store %arg7[%c6, %c0_3], %2 {strides = array<i32>} : memref<80x128xf32, #tpu.memory_space<vmem>>, vector<2x128xf32>,
    %c0_i32 = arith.constant 0 : i32
    %c0_i32_4 = arith.constant 0 : i32
    %4 = tpu.memref_slice %arg5[%arg0, %c0_i32, %c0_i32_4] : memref<2x64x128xf32, #tpu.memory_space<any>> -> memref<1x64x128xf32, #tpu.memory_space<any>>
    %5 = tpu.memref_squeeze %4 : memref<1x64x128xf32, #tpu.memory_space<any>> -> memref<64x128xf32, #tpu.memory_space<any>>
    %c8_i32 = arith.constant 8 : i32
    %c0_i32_5 = arith.constant 0 : i32
    %6 = tpu.memref_slice %arg7[%c8_i32, %c0_i32_5] : memref<80x128xf32, #tpu.memory_space<vmem>> -> memref<64x128xf32, #tpu.memory_space<vmem>>
    tpu.enqueue_dma source(%5 : memref<64x128xf32, #tpu.memory_space<any>>) target(%6 : memref<64x128xf32, #tpu.memory_space<vmem>>) target_semaphore(%arg8 : memref<!tpu.dma_semaphore, #tpu.memory_space<semaphore_mem>>)
    %c0_i32_6 = arith.constant 0 : i32
    %c0_i32_7 = arith.constant 0 : i32
    %7 = tpu.memref_slice %arg5[%arg0, %c0_i32_6, %c0_i32_7] : memref<2x64x128xf32, #tpu.memory_space<any>> -> memref<1x64x128xf32, #tpu.memory_space<any>>
    %8 = tpu.memref_squeeze %7 : memref<1x64x128xf32, #tpu.memory_space<any>> -> memref<64x128xf32, #tpu.memory_space<any>>
    %c8_i32_8 = arith.constant 8 : i32
    %c0_i32_9 = arith.constant 0 : i32
    %9 = tpu.memref_slice %arg7[%c8_i32_8, %c0_i32_9] : memref<80x128xf32, #tpu.memory_space<vmem>> -> memref<64x128xf32, #tpu.memory_space<vmem>>
    tpu.wait_dma2 semaphore(%arg8 : memref<!tpu.dma_semaphore, #tpu.memory_space<semaphore_mem>>) src(%8 : memref<64x128xf32, #tpu.memory_space<any>>) dst(%9 : memref<64x128xf32, #tpu.memory_space<vmem>>)
    %c0_10 = arith.constant 0 : index
    %c0_11 = arith.constant 0 : index
    %c0_12 = arith.constant 0 : index
    %10 = vector.load %arg4[%c0_10, %c0_11, %c0_12] : memref<1x2x128xf32, #tpu.memory_space<vmem>>, vector<1x2x128xf32>
    %11 = vector.shape_cast %10 : vector<1x2x128xf32> to vector<2x128xf32>
    %c72 = arith.constant 72 : index
    %c0_13 = arith.constant 0 : index
    %12 = vector.load %arg7[%c72, %c0_13] : memref<80x128xf32, #tpu.memory_space<vmem>>, vector<2x128xf32>
    tpu.vector_store %arg7[%c72, %c0_13], %11 {strides = array<i32>} : memref<80x128xf32, #tpu.memory_space<vmem>>, vector<2x128xf32>,
    %c6_i32 = arith.constant 6 : i32
    %13 = arith.addi %0, %c6_i32 : i32
    %14 = arith.index_cast %13 : i32 to index
    %c0_14 = arith.constant 0 : index
    %15 = vector.load %arg7[%14, %c0_14] : memref<80x128xf32, #tpu.memory_space<vmem>>, vector<64x128xf32>
    %c0_15 = arith.constant 0 : index
    %c0_16 = arith.constant 0 : index
    %c0_17 = arith.constant 0 : index
    %16 = vector.load %arg6[%c0_15, %c0_16, %c0_17] : memref<1x64x128xf32, #tpu.memory_space<vmem>>, vector<1x64x128xf32>
    %17 = vector.shape_cast %16 : vector<1x64x128xf32> to vector<64x128xf32>
    %18 = vector.shape_cast %15 : vector<64x128xf32> to vector<1x64x128xf32>
    tpu.vector_store %arg6[%c0_15, %c0_16, %c0_17], %18 {strides = array<i32>} : memref<1x64x128xf32, #tpu.memory_space<vmem>>, vector<1x64x128xf32>,
    return
  }
  func.func @transform_0(%arg0: i32, %arg1: i32, %arg2: memref<1xi32, #tpu.memory_space<smem>>) -> (i32, i32, i32) {
    %c0_i32 = arith.constant 0 : i32
    %c0_i32_0 = arith.constant 0 : i32
    %c0_i32_1 = arith.constant 0 : i32
    return %arg0, %c0_i32, %c0_i32_0 : i32, i32, i32
  }
  func.func @transform_1(%arg0: i32, %arg1: i32, %arg2: memref<1xi32, #tpu.memory_space<smem>>) -> (i32, i32, i32) {
    %c0_i32 = arith.constant 0 : i32
    %c0_i32_0 = arith.constant 0 : i32
    %c0_i32_1 = arith.constant 0 : i32
    return %arg0, %c0_i32, %c0_i32_0 : i32, i32, i32
  }
  func.func @transform_3(%arg0: i32, %arg1: i32, %arg2: memref<1xi32, #tpu.memory_space<smem>>) -> (i32, i32, i32) {
    %c0_i32 = arith.constant 0 : i32
    %c0_i32_0 = arith.constant 0 : i32
    return %arg0, %arg1, %c0_i32 : i32, i32, i32
  }
}

</mosaic_0001>

<bundles_post_ra>
// kernel: phase_shuffle.1
= control target key start
LH: loop header
LB: loop body
LE: loop exit
PB: predicated region body
PF: predicated region fallthrough
CT: control target
= control target key end

     0   :  { %s697_s0 = inlined_call_operand.<no memory space> [shape: s32[1], index: 0, kind: input, shape index: {}]   ;;  %s698_s1 = inlined_call_operand.vmem [shape: f32[2,2,128], index: 1, kind: input, shape index: {}]   ;;  %s699_s2 = inlined_call_operand.vmem [shape: f32[2,2,128], index: 2, kind: input, shape index: {}]   ;;  %s700_s3 = inlined_call_operand.hbm [shape: f32[2,64,128], index: 3, kind: input, shape index: {}]   ;;  %s701_s4 = inlined_call_operand.hbm [shape: f32[2,64,128], index: 4, kind: output, shape index: {}]  }
   0x1   :  { %9 = sst [smem:[#allocation5]] %s697_s0 }
   0x2   :  { %10 = vsyncpa [#allocation7], 0 }
   0x3   :  { %12 = vsyncpa [#allocation7 + $0x1], 0  ;;  %s549_s17 = smov 0   ;;  %s551_s18 = smov 0  }
   0x4   :  { %s553_s19 = smov 0   ;;  %s555_s20 = smov 0  }
   0x5   :  { %s557_s21 = smov 0   ;;  %s559_s22 = smov 0  }
   0x6 LB: > { %s326_s0 = sadd.s32 4294967295, %s514_s22   ;;  %s327_s23 = sadd.s32 4294967294, %s514_s22   ;;  %s514_s22 = sphi %s559_s22, %s18_s22   ;;  %s510_s21 = sphi %s557_s21, %s715_s21   ;;  %s506_s20 = sphi %s555_s20, %s714_s20   ;;  %s502_s19 = sphi %s553_s19, %s713_s19   ;;  %s498_s18 = sphi %s551_s18, %s712_s18   ;;  %s494_s17 = sphi %s549_s17, %s711_s17  }
   0x7   : > { %s30_s24 = sadd.s32 1, %s510_s21  ;;  %s91_s25 = sadd.s32 1, %s502_s19 }
   0x8   : > { %p32_p0 = scmp.ge.s32.totalorder %s30_s24, 2  ;;  %p101_p1 = scmp.ne.s32.totalorder %s502_s19, %s498_s18 }
   0x9   : > { %p102_p2 = scmp.eq.s32.totalorder %s326_s0, 1  ;;  %p107_p3 = scmp.ne.s32.totalorder %s498_s18, %s494_s17 }
   0xa   : > { %s717_s24 = smov (%p32_p0, %s30_s24), 0  ;;  %p108_p5 = scmp.eq.s32.totalorder %s327_s23, 1 }
   0xb   : > { %705 = sst [smem:[#allocation14_spill]] %s717_s24  ;;  %p589_p4 = por %p102_p2, %p101_p1 }
   0xc   : > { %s86_s27 = ssub.s32 %s510_s21, %s717_s24  ;;  %p330_p6 = scmp.ge.s32.totalorder %s514_s22, 1 }
   0xd   : > { %p89_p7 = scmp.eq.s32.totalorder %s86_s27, 0  ;;  %p596_p8 = por %p108_p5, %p107_p3 }
   0xe   : > { %p140_p9 = scmp.lt.s32.totalorder %s514_s22, 3 }
   0xf   : > { %s602_s29 = scalar_select %p89_p7, %s502_s19, %s91_s25  }
  0x10   : > { %p141_p10 = pnand %p330_p6, %p140_p9 }
  0x11   : > { %s702_s30 = sand.u32 (!%p141_p10), 1, %s498_s18   ;;  %p165_p11 = scmp.lt.s32.totalorder (!%p141_p10), %s506_s20, 1 }
  0x12   : > { %144 = sbr.rel (%p141_p10) target bundleno = 74 (0x4a), region = 28  ;;  %s608_s5 = sshll.u32 (!%p141_p10), %s702_s30, 6 }
  0x13   : > { %s610_s6 = sld [smem:[#allocation5]] (!%p141_p10)  ;;  %s703_s7 = sshll.u32 (!%p141_p10), %s506_s20, 10 }
  0x14   : > { %s619_s11 = scalar_lea.hbm (!%p141_p10), %s700_s3, %s703_s7  ;;  %s516_s13 = smov (!%p141_p10), [#allocation2 + $0x8]  }
  0x15   : > { %s188_s14 = sshll.u32 (!%p141_p10), %s516_s13, 4  ;;  %s410_s9 = scalar_lea.hbm (!%p141_p10), %s619_s11, 1024  ;;  %s189_s14 = int_to_ptr.vmem [resolvable:$true] %s188_s14 }
  0x16   : > { %p411_p12 = scmp.ne.s32.totalorder (!%p141_p10), %s619_s11, %s410_s9  ;;  %s412_s7 = scalar_lea.hbm (!%p141_p10), %s700_s3, 2048 }
  0x17   : > { %p413_p13 = scmp.lt.u32.totalorder (!%p141_p10), %s619_s11, %s700_s3  ;;  %p414_p0 = scmp.lt.u32.totalorder (!%p141_p10), %s412_s7, %s410_s9 }
  0x18   : > { %p416_p2 = scmp.lt.u32.totalorder (!%p141_p10), %s410_s9, %s619_s11 }
  0x19   : > { %s166_s8 = scalar_select %p165_p11, %s506_s20, 1 }
  0x1a   : > { %p415_p1 = por %p414_p0, %p413_p13 }
  0x1b   : > { %s332_s12 = sshll.u32 %s166_s8, 1 }
  0x1c   : > { %s168_s0 = scalar_lea.vmem %s698_s1, %s332_s12  ;;  %s172_s27 = scalar_lea.vmem %s699_s2, %s332_s12 }
  0x1d   : > { %v175_v0 = vld [vmem:[%s168_s0] sm:$0x3]  ;;  %p417_p3 = por %p416_p2, %p415_p1 }
  0x1e   : > { %176 = vst [vmem:[#allocation2 + $0x6] sm:$0x3] %v175_v0 }
  0x1f   : > { %p418_p5 = pnand %p417_p3, %p411_p12 }
  0x21   : > { %421 = shalt.err (!%p418_p5)  }
  0x22   : > { %s422_s12 = scalar_lea.vmem %s189_s14, 1024  ;;  %s517_s13 = smov [#allocation2]  }
  0x23   : > { %p423_p6 = scmp.ne.s32.totalorder %s189_s14, %s422_s12  ;;  %s424_s15 = sshll.u32 %s517_s13, 4  ;;  %s425_s15 = int_to_ptr.vmem [resolvable:$false] %s424_s15 }
  0x24   : > { %s426_s16 = scalar_lea.vmem %s425_s15, 1280  ;;  %p427_p7 = scmp.lt.s32.totalorder %s189_s14, %s425_s15 }
  0x25   : > { %p428_p9 = scmp.lt.s32.totalorder %s426_s16, %s422_s12 }
  0x27   : > { %p429_p10 = por %p428_p9, %p427_p7 }
  0x29   : > { %p430_p11 = pnand %p429_p10, %p423_p6 }
  0x2b   : > { %433 = shalt.err (!%p430_p11)  }
  0x2c   : > { %191 = dma.hbm_to_vmem [thread:$0]  %s619_s11, 1024, %s189_s14, [#allocation3] }
  0x2d   : > { %s164_s24 = scalar_lea.vmem [#allocation6], %s608_s5 }
  0x2e   : > { %486 = dma.done.wait [#allocation3], 1024 }
  0x2f   : > { %487 = vsyncadd [#allocation3], 4294966272  ;;  %v195_v1 = vld [vmem:[%s172_s27] sm:$0x3]  ;;  %s231_s30 = sshll.u32 %s164_s24, 4  ;;  %s278_s7 = scalar_lea.vmem [#allocation2], %s610_s6  ;;  %s647_s30 = int_to_ptr.vmem [resolvable:$true] %s231_s30 }
  0x30   : > { %196 = vst [vmem:[#allocation2 + $0x48] sm:$0x3] %v195_v1  ;;  %s708_s0 = sshll.u32 %s506_s20, 10  ;;  %s709_s20 = sand.u32 1, %s498_s18  }
  0x31   : > { %s645_s9 = scalar_lea.hbm %s701_s4, %s708_s0  ;;  %s651_s5 = scalar_lea.sflag [#allocation7], %s709_s20 }
  0x32   : > { %s434_s6 = scalar_lea.vmem %s647_s30, 1024  ;;  %s518_s11 = smov [#allocation6]  }
  0x33   : > { %p435_p12 = scmp.ne.s32.totalorder %s647_s30, %s434_s6  ;;  %s438_s14 = sshll.u32 %s518_s11, 4  ;;  %s439_s14 = int_to_ptr.vmem [resolvable:$false] %s438_s14 }
  0x34   : > { %s440_s27 = scalar_lea.vmem %s439_s14, 2048  ;;  %p441_p1 = scmp.lt.s32.totalorder %s647_s30, %s439_s14 }
  0x35   : > { %p436_p13 = pnand %p435_p12, %p589_p4  ;;  %p442_p2 = scmp.lt.s32.totalorder %s440_s27, %s434_s6 }
  0x37   : > { %v336_v2 = vld [vmem:[%s278_s7 + $0x6] sm:$0xff]  ;;  %v337_v3 = vld [vmem:[%s278_s7 + $0xe] sm:$0xff]  ;;  %v338_v4 = vld [vmem:[%s278_s7 + $0x16] sm:$0xff]  ;;  %p437_p0 = pneg %p436_p13  ;;  %p443_p3 = por %p442_p2, %p441_p1 }
  0x38   : > { %207 = vst [vmem:[%s164_s24] sm:$0xff] %v336_v2  ;;  %208 = vst [vmem:[%s164_s24 + $0x8] sm:$0xff] %v337_v3  ;;  %v339_v5 = vld [vmem:[%s278_s7 + $0x1e] sm:$0xff]  ;;  %v340_v6 = vld [vmem:[%s278_s7 + $0x26] sm:$0xff] }
  0x39   : > { %209 = vst [vmem:[%s164_s24 + $0x10] sm:$0xff] %v338_v4  ;;  %v341_v7 = vld [vmem:[%s278_s7 + $0x2e] sm:$0xff]  ;;  %210 = vst [vmem:[%s164_s24 + $0x18] sm:$0xff] %v339_v5  ;;  %v342_v8 = vld [vmem:[%s278_s7 + $0x36] sm:$0xff]  ;;  %p444_p5 = pnand %p443_p3, %p437_p0 }
  0x3a   : > { %211 = vst [vmem:[%s164_s24 + $0x20] sm:$0xff] %v340_v6  ;;  %212 = vst [vmem:[%s164_s24 + $0x28] sm:$0xff] %v341_v7  ;;  %v343_v9 = vld [vmem:[%s278_s7 + $0x3e] sm:$0xff] }
  0x3b   : > { %213 = vst [vmem:[%s164_s24 + $0x30] sm:$0xff] %v342_v8  ;;  %214 = vst [vmem:[%s164_s24 + $0x38] sm:$0xff] %v343_v9 }
  0x3c   : > { %447 = shalt.err (!%p444_p5)
}
  0x3d   : > { %s448_s10 = scalar_lea.hbm %s645_s9, 1024  ;;  %s452_s13 = scalar_lea.hbm %s701_s4, 2048 }
  0x3e   : > { %p449_p6 = scmp.ne.s32.totalorder %s645_s9, %s448_s10  ;;  %p453_p10 = scmp.lt.u32.totalorder %s645_s9, %s701_s4 }
  0x3f   : > { %p454_p11 = scmp.lt.u32.totalorder %s452_s13, %s448_s10  ;;  %p456_p13 = scmp.lt.u32.totalorder %s448_s10, %s645_s9 }
  0x40   : > { %p450_p7 = pnand %p449_p6, %p589_p4 }
  0x41   : > { %p455_p12 = por %p454_p11, %p453_p10 }
  0x42   : > { %p451_p9 = pneg %p450_p7 }
  0x43   : > { %p457_p0 = por %p456_p13, %p455_p12 }
  0x45   : > { %p458_p1 = pnand %p457_p0, %p451_p9 }
  0x47   : > { %461 = shalt.err (!%p458_p1)
}
  0x48   : > { %s519_s24 = smov 128   ;;  %s520_s7 = smov 8  }
  0x49   : > { %352 = dma.vmem_to_hbm [thread:$0]  (%p589_p4), %s647_s30, 1024, %s645_s9, %s651_s5, %s519_s24, %s519_s24, %s520_s7  }
  0x4a PF: > { %p358_p2 = scmp.ge.s32.totalorder %s514_s22, 2  ;;  %s246_s0 = sand.u32 1, %s494_s17  }
  0x4b   : > { %s247_s23 = scalar_lea.sflag [#allocation7], %s246_s0 }
  0x4c   : > { %p355_p3 = pnand %p358_p2, %p596_p8 }
  0x4e   : > { %489 = dma.done.wait (!%p355_p3), %s247_s23, 1024  }
  0x4f   : > { %491 = vsyncadd (!%p355_p3), %s247_s23, 4294966272  ;;  %s18_s22 = sadd.s32 1, %s514_s22   ;;  %s710_s26 = sld [smem:[#allocation14_spill]] }
  0x50   : > { %p15_p5 = scmp.ge.s32.totalorder %s18_s22, 4   ;;  %s711_s17 = smov %s498_s18 }
  0x51   : > { %s712_s18 = smov %s502_s19  ;;  %s713_s19 = smov %s602_s29 }
  0x52   : > { %s714_s20 = smov %s510_s21  ;;  %17 = sbr.rel (!%p15_p5) target bundleno = 6 (0x6), region = 73 }
  0x55   : > { %s715_s21 = smov %s710_s26 }
  0x59   :  { %252 = vsyncpa [#allocation7], 1 }
  0x5a   :  { %254 = vsyncpa [#allocation7 + $0x1], 1 }
  0x5b   :  { %255 = vsyncmov [#allocation3] }
  0x5e   :  { %s256_s28 = vpop.sfrf %255 }
  0x5f   :  { %p349_p4 = scmp.ne.s32.totalorder %s256_s28, 0 }
  0x61   :  { %260 = shalt.err (%p349_p4)  }

</bundles_post_ra>
